<compile_context>
chip_gen: v5e
topology: v5e:2x2
jax: 0.10.0
libtpu: 0.0.40
codegen_flags: <defaults>
</compile_context>

<pallas_src>
import numpy as np
import jax
import jax.numpy as jnp
from jax import lax
from jax.experimental import pallas as pl
from jax.experimental.pallas import tpu as pltpu

# ----------------------- small synthetic face-model sizes -----------------------
B     = 2      # batch size
V     = 128    # number of vertices
T     = 128    # number of triangles
K     = 8      # faces adjacent to each vertex (point_buf width)
N_ID  = 16     # identity basis
N_EXP = 64     # expression basis (matches the delta.shape[1] == 64 branch)
N_TEX = 16     # texture basis
NC    = N_ID + N_EXP + N_TEX + 1   # 97 live coef cols (+1: constant-one -> means row)
NC_PAD = 128                       # padded contraction dim (clean MXU tiles)
TN    = 128                        # blend N-tile width (== V so tiles align with coords)
NBLK  = (6 * V) // TN              # 6 grid steps: X, Y, Z, tex0, tex1, tex2
assert TN == V and NBLK == 6


def euler_matrices(angles):
    """XYZ Tait-Bryan rotation, (B,3) -> (B,3,3). Same math as the torch helper."""
    s = jnp.sin(angles)
    c = jnp.cos(angles)
    c0, c1, c2 = c[:, 0], c[:, 1], c[:, 2]
    s0, s1, s2 = s[:, 0], s[:, 1], s[:, 2]
    flattened = jnp.concatenate([
        c2 * c1, c2 * s1 * s0 - c0 * s2, s2 * s0 + c2 * c0 * s1,
        c1 * s2, c2 * c0 + s2 * s1 * s0, c0 * s2 * s1 - c2 * s0,
        -s1, c1 * s0, c1 * c0])
    return jnp.transpose(flattened.reshape(3, 3, -1), (2, 0, 1))


# ------------------------ fused Pallas kernel ------------------------
def _face_kernel(coef_ref, basis_ref, ecat_ref, adjt_ref, pose_ref, out_ref, geo_sc):
    j = pl.program_id(0)

    # One N-tile of the blendshape matmul:
    #   (B, NC_PAD) bf16 @ (NC_PAD, TN) bf16 -> (B, TN) f32
    # Means are folded in via the constant-1 coefficient column (basis row NC-1).
    tile = jnp.dot(coef_ref[...], basis_ref[...],
                   preferred_element_type=jnp.float32)

    # Steps 0..2: geometry tiles (channel-major X, Y, Z for both batches) -> scratch.
    for c in range(3):
        @pl.when(j == c)
        def _(c=c):
            geo_sc[c * B:(c + 1) * B, :] = tile

    # Steps 3..5: texture tiles (vertex-major) -> straight into the packed output.
    for c in range(3):
        @pl.when(j == 3 + c)
        def _(c=c):
            out_ref[:, (6 + c) * V:(7 + c) * V] = tile

    # Last step: triangle edges, face/vertex normals, world transform, packed store.
    @pl.when(j == NBLK - 1)
    def _():
        geo_rows = geo_sc[...]                          # (3B, V) f32 = [X; Y; Z]
        X = geo_rows[0 * B:1 * B, :]
        Y = geo_rows[1 * B:2 * B, :]
        Z = geo_rows[2 * B:3 * B, :]

        # Triangle edge vectors via precomputed difference-selection matrices:
        #   e1 = geo @ (S1 - S2),  e2 = geo @ (S2 - S3)
        # RHS is stored bf16 in HBM (exact +-1) and upcast here; LHS stays f32 so
        # the ill-conditioned normalize stage keeps full precision.
        e_all = jnp.dot(geo_rows, ecat_ref[...].astype(jnp.float32),
                        preferred_element_type=jnp.float32)      # (3B, 2T)
        e1 = e_all[:, 0:T]
        e2 = e_all[:, T:2 * T]
        e1x, e1y, e1z = e1[0:B], e1[B:2 * B], e1[2 * B:3 * B]
        e2x, e2y, e2z = e2[0:B], e2[B:2 * B], e2[2 * B:3 * B]

        # face normals = e1 x e2  (VPU, both batches at once)
        fnx = e1y * e2z - e1z * e2y
        fny = e1z * e2x - e1x * e2z
        fnz = e1x * e2y - e1y * e2x
        fn_rows = jnp.concatenate([fnx, fny, fnz], axis=0)       # (3B, T)

        # vertex normals = count-weighted sum over adjacent faces
        vn_all = jnp.dot(fn_rows, adjt_ref[...].astype(jnp.float32),
                         preferred_element_type=jnp.float32)     # (3B, V)
        vnx, vny, vnz = vn_all[0:B], vn_all[B:2 * B], vn_all[2 * B:3 * B]

        # F.normalize(dim=2, eps=1e-12)  ==  v * rsqrt(max(|v|^2, 1e-24))
        ss = vnx * vnx + vny * vny + vnz * vnz
        inv = lax.rsqrt(jnp.maximum(ss, 1e-24))
        vnx = vnx * inv
        vny = vny * inv
        vnz = vnz * inv

        # World transform  R @ (x - t)  /  R @ n, vectorized over the batch:
        # (B,1) pose columns broadcast onto (B,V) planes.
        Rcols = [pose_ref[:, k:k + 1] for k in range(9)]         # R[b, i, k] at 3i+k
        tx = pose_ref[:, 9:10]
        ty = pose_ref[:, 10:11]
        tz = pose_ref[:, 11:12]
        Xc = X - tx
        Yc = Y - ty
        Zc = Z - tz

        pieces = []
        for i in range(3):
            pieces.append(Rcols[3 * i] * Xc + Rcols[3 * i + 1] * Yc
                          + Rcols[3 * i + 2] * Zc)               # geo world, coord i
        for i in range(3):
            pieces.append(Rcols[3 * i] * vnx + Rcols[3 * i + 1] * vny
                          + Rcols[3 * i + 2] * vnz)              # normal world, coord i
        out_ref[:, 0:6 * V] = jnp.concatenate(pieces, axis=1)    # lane-dense (B, 6V)


def face_model_pallas(coef, basis_comb, e_cat, adjT, pose):
    return pl.pallas_call(
        _face_kernel,
        grid=(NBLK,),
        out_shape=jax.ShapeDtypeStruct((B, 9 * V), jnp.float32),   # [geo_cm|norm_cm|tex]
        in_specs=[
            pl.BlockSpec((B, NC_PAD), lambda j: (0, 0)),           # coef (bf16), fetched once
            pl.BlockSpec((NC_PAD, TN), lambda j: (0, j)),          # basis N-tile (bf16), pipelined
            pl.BlockSpec((V, 2 * T), lambda j: (0, 0)),            # e_cat (bf16), fetched once
            pl.BlockSpec((T, V), lambda j: (0, 0)),                # adjT (bf16), fetched once
            pl.BlockSpec((B, 12), lambda j: (0, 0)),               # pose [R(9) | t(3)] f32
        ],
        out_specs=pl.BlockSpec((B, 9 * V), lambda j: (0, 0)),      # resident accumulator block
        scratch_shapes=[pltpu.VMEM((3 * B, V), jnp.float32)],      # channel-major geo scratch
        compiler_params=pltpu.CompilerParams(dimension_semantics=("arbitrary",)),
    )(coef, basis_comb, e_cat, adjT, pose)


# ------------------------------ parameter setup ------------------------------
def _round_bf16(x):
    """Snap values to the bf16 grid (kept as f32) so bf16 MXU operands are exact."""
    return np.asarray(jnp.asarray(x).astype(jnp.bfloat16).astype(jnp.float32))


def make_params(seed=0):
    key = jax.random.PRNGKey(seed)
    ks = jax.random.split(key, 8)
    geo_mean = _round_bf16(jax.random.normal(ks[0], (3 * V, 1), jnp.float32))
    tex_mean = _round_bf16(jax.random.normal(ks[1], (3 * V, 1), jnp.float32))
    id_base = _round_bf16(0.1 * jax.random.normal(ks[2], (3 * V, N_ID), jnp.float32))
    exp_base = _round_bf16(0.1 * jax.random.normal(ks[3], (3 * V, N_EXP), jnp.float32))
    tex_base = _round_bf16(0.1 * jax.random.normal(ks[4], (3 * V, N_TEX), jnp.float32))
    triangles = np.asarray(jax.random.randint(ks[5], (T, 3), 0, V, jnp.int32))
    # point_buf: K face indices per vertex; index == T points at the appended zero row
    point_buf = np.asarray(jax.random.randint(ks[6], (V, K), 0, T + 1, jnp.int32))

    p = {}
    # raw params (reference path / landmarks) -- same bf16-representable values
    p["geo_mean"] = jnp.asarray(geo_mean)
    p["tex_mean"] = jnp.asarray(tex_mean)
    p["id_base"] = jnp.asarray(id_base)
    p["exp_base"] = jnp.asarray(exp_base)
    p["tex_base"] = jnp.asarray(tex_base)
    p["triangles"] = jnp.asarray(triangles)
    p["point_buf"] = jnp.asarray(point_buf)
    p["landmark_index"] = jnp.array([3, 17, 42, 55, 60, 77, 90, 120], jnp.int32)

    # --- one-time preprocessing for the fused kernel (numpy, outside any kernel) ---
    # channel-major reorder of the flat (v*3 + c) geometry index -> (c*V + v)
    cm_order = (np.arange(3)[:, None] + 3 * np.arange(V)[None, :]).reshape(-1)

    # combined basis, padded to NC_PAD rows, stored bf16:
    #   coef [alpha | delta | beta | 1 | 0-pad] -> [geo (channel-major) | tex (vertex-major)]
    geo_basis_vm = np.concatenate([id_base, exp_base], axis=1)        # (3V, N_ID+N_EXP)
    basis_comb = np.zeros((NC_PAD, 6 * V), np.float32)
    basis_comb[0:N_ID + N_EXP, 0:3 * V] = geo_basis_vm[cm_order, :].T
    basis_comb[N_ID + N_EXP:N_ID + N_EXP + N_TEX, 3 * V:6 * V] = tex_base.T
    basis_comb[NC - 1, 0:3 * V] = geo_mean[cm_order, 0]               # bias row = means
    basis_comb[NC - 1, 3 * V:6 * V] = tex_mean[:, 0]
    p["basis_comb"] = jnp.asarray(basis_comb, jnp.bfloat16)           # (NC_PAD, 6V) bf16

    # edge-difference selection matrices: e1 = geo @ (S1-S2), e2 = geo @ (S2-S3)
    S = np.zeros((3, V, T), np.float32)
    for k in range(3):
        S[k, triangles[:, k], np.arange(T)] = 1.0
    p["e_cat"] = jnp.asarray(np.concatenate([S[0] - S[1], S[1] - S[2]], axis=1),
                             jnp.bfloat16)                            # (V, 2T) bf16 (exact)

    # dense face->vertex adjacency (count-weighted); pad index T -> dropped row
    A = np.zeros((V, T), np.float32)
    for v in range(V):
        for kk in range(K):
            f = int(point_buf[v, kk])
            if f < T:
                A[v, f] += 1.0
    p["adjT"] = jnp.asarray(A.T, jnp.bfloat16)                        # (T, V) bf16 (exact)
    return p


# --------------------------------- forward ---------------------------------
def face_model_forward(params, alpha, delta, beta, rotation, translation, gamma):
    # delta.shape[1] == 64 branch of build_face_model; coef padded to NC_PAD with zeros.
    coef = jnp.concatenate(
        [alpha[:, :, 0], delta[:, :, 0], beta[:, :, 0],
         jnp.ones((B, 1), jnp.float32),
         jnp.zeros((B, NC_PAD - NC), jnp.float32)], axis=1).astype(jnp.bfloat16)
    pose = jnp.concatenate([euler_matrices(rotation).reshape(B, 9),
                            translation[:, :, 0]], axis=1)            # (B, 12) f32

    packed = face_model_pallas(coef, params["basis_comb"], params["e_cat"],
                               params["adjT"], pose)                  # (B, 9V)

    geo_cm = packed[:, 0:3 * V].reshape(B, 3, V)      # world geometry, channel-major
    norm_cm = packed[:, 3 * V:6 * V].reshape(B, 3, V) # world normals, channel-major
    tex = packed[:, 6 * V:9 * V].reshape(B, V, 3)     # texture, vertex-major

    # TODO(synk): Camera / Renderer / MeshRefinementModel are undefined in the
    # reference source; landmarks come from world-space geometry and refined_tex
    # falls back to tex.
    landmarks = jnp.transpose(geo_cm[:, :, params["landmark_index"]], (0, 2, 1))
    refined_tex = tex
    return geo_cm, norm_cm, landmarks, tex, refined_tex


# -------------------------- pure-JAX reference check --------------------------
def reference_forward(params, alpha, delta, beta, rotation, translation):
    geo_flat = (params["geo_mean"][:, 0][None]
                + alpha[:, :, 0] @ params["id_base"].T
                + delta[:, :, 0] @ params["exp_base"].T)
    tex_flat = params["tex_mean"][:, 0][None] + beta[:, :, 0] @ params["tex_base"].T
    geo = geo_flat.reshape(B, V, 3)
    tex = tex_flat.reshape(B, V, 3)
    tri = params["triangles"]
    v1, v2, v3 = geo[:, tri[:, 0]], geo[:, tri[:, 1]], geo[:, tri[:, 2]]
    fn = jnp.cross(v1 - v2, v2 - v3)
    fn = jnp.concatenate([fn, jnp.zeros((B, 1, 3), jnp.float32)], axis=1)
    vn = fn[:, params["point_buf"], :].sum(2)
    vn = vn / jnp.maximum(jnp.linalg.norm(vn, axis=2, keepdims=True), 1e-12)
    m2w = jnp.transpose(euler_matrices(rotation), (0, 2, 1))
    geo_w = jnp.matmul(geo - jnp.transpose(translation, (0, 2, 1)), m2w)
    norm_w = jnp.matmul(vn, m2w)
    landmarks = geo_w[:, params["landmark_index"], :]
    return geo_w, norm_w, landmarks, tex


if __name__ == "__main__":
    params = make_params(0)
    key = jax.random.PRNGKey(0)
    ka, kd, kb, kr, kt, kg = jax.random.split(key, 6)
    snap = lambda x: x.astype(jnp.bfloat16).astype(jnp.float32)   # bf16-representable inputs
    alpha = snap(jax.random.normal(ka, (B, N_ID, 1), jnp.float32))
    delta = snap(jax.random.normal(kd, (B, N_EXP, 1), jnp.float32))
    beta = snap(jax.random.normal(kb, (B, N_TEX, 1), jnp.float32))
    rotation = 0.2 * jax.random.normal(kr, (B, 3), jnp.float32)
    translation = jax.random.normal(kt, (B, 3, 1), jnp.float32)
    gamma = jax.random.normal(kg, (B, 27), jnp.float32)   # unused (renderer omitted)

    fwd = jax.jit(face_model_forward)
    outs = jax.block_until_ready(
        fwd(params, alpha, delta, beta, rotation, translation, gamma))
    geo_cm, norm_cm, landmarks, tex, refined_tex = outs

    ref_geo, ref_norm, ref_lmk, ref_tex = reference_forward(
        params, alpha, delta, beta, rotation, translation)
    ref_geo_cm = jnp.transpose(ref_geo, (0, 2, 1))
    ref_norm_cm = jnp.transpose(ref_norm, (0, 2, 1))

    np.testing.assert_allclose(np.asarray(geo_cm), np.asarray(ref_geo_cm), rtol=2e-2, atol=2e-2)
    np.testing.assert_allclose(np.asarray(norm_cm), np.asarray(ref_norm_cm), rtol=2e-2, atol=2e-2)
    np.testing.assert_allclose(np.asarray(landmarks), np.asarray(ref_lmk), rtol=2e-2, atol=2e-2)
    np.testing.assert_allclose(np.asarray(tex), np.asarray(ref_tex), rtol=2e-2, atol=2e-2)
    np.testing.assert_allclose(np.asarray(refined_tex), np.asarray(ref_tex), rtol=2e-2, atol=2e-2)

    print("KERNEL_OK")
</pallas_src>

<mosaic_0001>
module attributes {stable_mosaic.version = 11 : i64} {
  func.func @_face_kernel(%arg0: i32, %arg1: memref<2x128xbf16, #tpu.memory_space<vmem>>, %arg2: memref<128x128xbf16, #tpu.memory_space<vmem>>, %arg3: memref<128x256xbf16, #tpu.memory_space<vmem>>, %arg4: memref<128x128xbf16, #tpu.memory_space<vmem>>, %arg5: memref<2x12xf32, #tpu.memory_space<vmem>>, %arg6: memref<2x1152xf32, #tpu.memory_space<vmem>>, %arg7: memref<6x128xf32, #tpu.memory_space<vmem>>) attributes {dimension_semantics = [#tpu.dimension_semantics<arbitrary>], iteration_bounds = array<i64: 6>, scalar_prefetch = 0 : i64, scratch_operands = 1 : i64, tpu.core_type = #tpu.core_type<tc>, window_params = [{pipeline_mode = #tpu.pipeline_mode<synchronous>, transform_indices = @transform_0, window_bounds = array<i64: 2, 128>}, {transform_indices = @transform_1, window_bounds = array<i64: 128, 128>}, {pipeline_mode = #tpu.pipeline_mode<synchronous>, transform_indices = @transform_2, window_bounds = array<i64: 128, 256>}, {pipeline_mode = #tpu.pipeline_mode<synchronous>, transform_indices = @transform_3, window_bounds = array<i64: 128, 128>}, {pipeline_mode = #tpu.pipeline_mode<synchronous>, transform_indices = @transform_4, window_bounds = array<i64: 2, 12>}, {pipeline_mode = #tpu.pipeline_mode<synchronous>, transform_indices = @transform_5, window_bounds = array<i64: 2, 1152>}]} {
    %c0 = arith.constant 0 : index
    %c0_0 = arith.constant 0 : index
    %0 = vector.load %arg1[%c0, %c0_0] : memref<2x128xbf16, #tpu.memory_space<vmem>>, vector<2x128xbf16>
    %c0_1 = arith.constant 0 : index
    %c0_2 = arith.constant 0 : index
    %1 = vector.load %arg2[%c0_1, %c0_2] : memref<128x128xbf16, #tpu.memory_space<vmem>>, vector<128x128xbf16>
    %cst = arith.constant dense<0.000000e+00> : vector<2x128xf32>
    %2 = tpu.matmul %0, %1, %cst {dimension_numbers = #tpu.dot_dimension_numbers<[1], [0], [0], [1], [0, 0, 1, 1], [], []>} : vector<2x128xbf16>, vector<128x128xbf16>, vector<2x128xf32> -> vector<2x128xf32>
    %c0_i32 = arith.constant 0 : i32
    %3 = arith.cmpi eq, %arg0, %c0_i32 : i32
    %4 = arith.extui %3 : i1 to i32
    %c0_i32_3 = arith.constant 0 : i32
    %5 = arith.cmpi ne, %4, %c0_i32_3 : i32
    scf.if %5 {
      %c0_11 = arith.constant 0 : index
      %c0_12 = arith.constant 0 : index
      %24 = vector.load %arg7[%c0_11, %c0_12] : memref<6x128xf32, #tpu.memory_space<vmem>>, vector<2x128xf32>
      tpu.vector_store %arg7[%c0_11, %c0_12], %2 {strides = array<i32>} : memref<6x128xf32, #tpu.memory_space<vmem>>, vector<2x128xf32>,
    } else {
    }
    %c1_i32 = arith.constant 1 : i32
    %6 = arith.cmpi eq, %arg0, %c1_i32 : i32
    %7 = arith.extui %6 : i1 to i32
    %c0_i32_4 = arith.constant 0 : i32
    %8 = arith.cmpi ne, %7, %c0_i32_4 : i32
    scf.if %8 {
      %c2 = arith.constant 2 : index
      %c0_11 = arith.constant 0 : index
      %24 = vector.load %arg7[%c2, %c0_11] : memref<6x128xf32, #tpu.memory_space<vmem>>, vector<2x128xf32>
      tpu.vector_store %arg7[%c2, %c0_11], %2 {strides = array<i32>} : memref<6x128xf32, #tpu.memory_space<vmem>>, vector<2x128xf32>,
    } else {
    }
    %c2_i32 = arith.constant 2 : i32
    %9 = arith.cmpi eq, %arg0, %c2_i32 : i32
    %10 = arith.extui %9 : i1 to i32
    %c0_i32_5 = arith.constant 0 : i32
    %11 = arith.cmpi ne, %10, %c0_i32_5 : i32
    scf.if %11 {
      %c4 = arith.constant 4 : index
      %c0_11 = arith.constant 0 : index
      %24 = vector.load %arg7[%c4, %c0_11] : memref<6x128xf32, #tpu.memory_space<vmem>>, vector<2x128xf32>
      tpu.vector_store %arg7[%c4, %c0_11], %2 {strides = array<i32>} : memref<6x128xf32, #tpu.memory_space<vmem>>, vector<2x128xf32>,
    } else {
    }
    %c3_i32 = arith.constant 3 : i32
    %12 = arith.cmpi eq, %arg0, %c3_i32 : i32
    %13 = arith.extui %12 : i1 to i32
    %c0_i32_6 = arith.constant 0 : i32
    %14 = arith.cmpi ne, %13, %c0_i32_6 : i32
    scf.if %14 {
      %c0_11 = arith.constant 0 : index
      %c768 = arith.constant 768 : index
      %24 = vector.load %arg6[%c0_11, %c768] : memref<2x1152xf32, #tpu.memory_space<vmem>>, vector<2x128xf32>
      tpu.vector_store %arg6[%c0_11, %c768], %2 {strides = array<i32>} : memref<2x1152xf32, #tpu.memory_space<vmem>>, vector<2x128xf32>,
    } else {
    }
    %c4_i32 = arith.constant 4 : i32
    %15 = arith.cmpi eq, %arg0, %c4_i32 : i32
    %16 = arith.extui %15 : i1 to i32
    %c0_i32_7 = arith.constant 0 : i32
    %17 = arith.cmpi ne, %16, %c0_i32_7 : i32
    scf.if %17 {
      %c0_11 = arith.constant 0 : index
      %c896 = arith.constant 896 : index
      %24 = vector.load %arg6[%c0_11, %c896] : memref<2x1152xf32, #tpu.memory_space<vmem>>, vector<2x128xf32>
      tpu.vector_store %arg6[%c0_11, %c896], %2 {strides = array<i32>} : memref<2x1152xf32, #tpu.memory_space<vmem>>, vector<2x128xf32>,
    } else {
    }
    %c5_i32 = arith.constant 5 : i32
    %18 = arith.cmpi eq, %arg0, %c5_i32 : i32
    %19 = arith.extui %18 : i1 to i32
    %c0_i32_8 = arith.constant 0 : i32
    %20 = arith.cmpi ne, %19, %c0_i32_8 : i32
    scf.if %20 {
      %c0_11 = arith.constant 0 : index
      %c1024 = arith.constant 1024 : index
      %24 = vector.load %arg6[%c0_11, %c1024] : memref<2x1152xf32, #tpu.memory_space<vmem>>, vector<2x128xf32>
      tpu.vector_store %arg6[%c0_11, %c1024], %2 {strides = array<i32>} : memref<2x1152xf32, #tpu.memory_space<vmem>>, vector<2x128xf32>,
    } else {
    }
    %c5_i32_9 = arith.constant 5 : i32
    %21 = arith.cmpi eq, %arg0, %c5_i32_9 : i32
    %22 = arith.extui %21 : i1 to i32
    %c0_i32_10 = arith.constant 0 : i32
    %23 = arith.cmpi ne, %22, %c0_i32_10 : i32
    scf.if %23 {
      %c0_11 = arith.constant 0 : index
      %c0_12 = arith.constant 0 : index
      %24 = vector.load %arg7[%c0_11, %c0_12] : memref<6x128xf32, #tpu.memory_space<vmem>>, vector<6x128xf32>
      %25 = vector.extract_strided_slice %24 {offsets = [0, 0], sizes = [2, 128], strides = [1, 1]} : vector<6x128xf32> to vector<2x128xf32>
      %26 = vector.extract_strided_slice %24 {offsets = [2, 0], sizes = [2, 128], strides = [1, 1]} : vector<6x128xf32> to vector<2x128xf32>
      %27 = vector.extract_strided_slice %24 {offsets = [4, 0], sizes = [2, 128], strides = [1, 1]} : vector<6x128xf32> to vector<2x128xf32>
      %c0_13 = arith.constant 0 : index
      %c0_14 = arith.constant 0 : index
      %28 = vector.load %arg3[%c0_13, %c0_14] : memref<128x256xbf16, #tpu.memory_space<vmem>>, vector<128x256xbf16>
      %29 = arith.extf %28 : vector<128x256xbf16> to vector<128x256xf32>
      %cst_15 = arith.constant dense<0.000000e+00> : vector<6x256xf32>
      %30 = tpu.matmul %24, %29, %cst_15 {dimension_numbers = #tpu.dot_dimension_numbers<[1], [0], [0], [1], [0, 0, 1, 1], [], []>} : vector<6x128xf32>, vector<128x256xf32>, vector<6x256xf32> -> vector<6x256xf32>
      %31 = vector.extract_strided_slice %30 {offsets = [0, 0], sizes = [6, 128], strides = [1, 1]} : vector<6x256xf32> to vector<6x128xf32>
      %32 = vector.extract_strided_slice %30 {offsets = [0, 128], sizes = [6, 128], strides = [1, 1]} : vector<6x256xf32> to vector<6x128xf32>
      %33 = vector.extract_strided_slice %31 {offsets = [0, 0], sizes = [2, 128], strides = [1, 1]} : vector<6x128xf32> to vector<2x128xf32>
      %34 = vector.extract_strided_slice %31 {offsets = [2, 0], sizes = [2, 128], strides = [1, 1]} : vector<6x128xf32> to vector<2x128xf32>
      %35 = vector.extract_strided_slice %31 {offsets = [4, 0], sizes = [2, 128], strides = [1, 1]} : vector<6x128xf32> to vector<2x128xf32>
      %36 = vector.extract_strided_slice %32 {offsets = [0, 0], sizes = [2, 128], strides = [1, 1]} : vector<6x128xf32> to vector<2x128xf32>
      %37 = vector.extract_strided_slice %32 {offsets = [2, 0], sizes = [2, 128], strides = [1, 1]} : vector<6x128xf32> to vector<2x128xf32>
      %38 = vector.extract_strided_slice %32 {offsets = [4, 0], sizes = [2, 128], strides = [1, 1]} : vector<6x128xf32> to vector<2x128xf32>
      %39 = arith.mulf %34, %38 : vector<2x128xf32>
      %40 = arith.mulf %35, %37 : vector<2x128xf32>
      %41 = arith.subf %39, %40 : vector<2x128xf32>
      %42 = arith.mulf %35, %36 : vector<2x128xf32>
      %43 = arith.mulf %33, %38 : vector<2x128xf32>
      %44 = arith.subf %42, %43 : vector<2x128xf32>
      %45 = arith.mulf %33, %37 : vector<2x128xf32>
      %46 = arith.mulf %34, %36 : vector<2x128xf32>
      %47 = arith.subf %45, %46 : vector<2x128xf32>
      %48 = tpu.concatenate %41, %44, %47 in 0 : vector<2x128xf32>, vector<2x128xf32>, vector<2x128xf32> -> vector<6x128xf32>
      %c0_16 = arith.constant 0 : index
      %c0_17 = arith.constant 0 : index
      %49 = vector.load %arg4[%c0_16, %c0_17] : memref<128x128xbf16, #tpu.memory_space<vmem>>, vector<128x128xbf16>
      %50 = arith.extf %49 : vector<128x128xbf16> to vector<128x128xf32>
      %cst_18 = arith.constant dense<0.000000e+00> : vector<6x128xf32>
      %51 = tpu.matmul %48, %50, %cst_18 {dimension_numbers = #tpu.dot_dimension_numbers<[1], [0], [0], [1], [0, 0, 1, 1], [], []>} : vector<6x128xf32>, vector<128x128xf32>, vector<6x128xf32> -> vector<6x128xf32>
      %52 = vector.extract_strided_slice %51 {offsets = [0, 0], sizes = [2, 128], strides = [1, 1]} : vector<6x128xf32> to vector<2x128xf32>
      %53 = vector.extract_strided_slice %51 {offsets = [2, 0], sizes = [2, 128], strides = [1, 1]} : vector<6x128xf32> to vector<2x128xf32>
      %54 = vector.extract_strided_slice %51 {offsets = [4, 0], sizes = [2, 128], strides = [1, 1]} : vector<6x128xf32> to vector<2x128xf32>
      %55 = arith.mulf %52, %52 : vector<2x128xf32>
      %56 = arith.mulf %53, %53 : vector<2x128xf32>
      %57 = arith.addf %55, %56 : vector<2x128xf32>
      %58 = arith.mulf %54, %54 : vector<2x128xf32>
      %59 = arith.addf %57, %58 : vector<2x128xf32>
      %cst_19 = arith.constant 1.000000e-24 : f32
      %60 = vector.broadcast %cst_19 : f32 to vector<2x128xf32>
      %61 = arith.maximumf %59, %60 : vector<2x128xf32>
      %62 = math.rsqrt %61 : vector<2x128xf32>
      %63 = arith.mulf %52, %62 : vector<2x128xf32>
      %64 = arith.mulf %53, %62 : vector<2x128xf32>
      %65 = arith.mulf %54, %62 : vector<2x128xf32>
      %c0_20 = arith.constant 0 : index
      %c0_21 = arith.constant 0 : index
      %66 = vector.load %arg5[%c0_20, %c0_21] : memref<2x12xf32, #tpu.memory_space<vmem>>, vector<2x1xf32>
      %c0_22 = arith.constant 0 : index
      %c1 = arith.constant 1 : index
      %67 = vector.load %arg5[%c0_22, %c1] : memref<2x12xf32, #tpu.memory_space<vmem>>, vector<2x1xf32>
      %c0_23 = arith.constant 0 : index
      %c2 = arith.constant 2 : index
      %68 = vector.load %arg5[%c0_23, %c2] : memref<2x12xf32, #tpu.memory_space<vmem>>, vector<2x1xf32>
      %c0_24 = arith.constant 0 : index
      %c3 = arith.constant 3 : index
      %69 = vector.load %arg5[%c0_24, %c3] : memref<2x12xf32, #tpu.memory_space<vmem>>, vector<2x1xf32>
      %c0_25 = arith.constant 0 : index
      %c4 = arith.constant 4 : index
      %70 = vector.load %arg5[%c0_25, %c4] : memref<2x12xf32, #tpu.memory_space<vmem>>, vector<2x1xf32>
      %c0_26 = arith.constant 0 : index
      %c5 = arith.constant 5 : index
      %71 = vector.load %arg5[%c0_26, %c5] : memref<2x12xf32, #tpu.memory_space<vmem>>, vector<2x1xf32>
      %c0_27 = arith.constant 0 : index
      %c6 = arith.constant 6 : index
      %72 = vector.load %arg5[%c0_27, %c6] : memref<2x12xf32, #tpu.memory_space<vmem>>, vector<2x1xf32>
      %c0_28 = arith.constant 0 : index
      %c7 = arith.constant 7 : index
      %73 = vector.load %arg5[%c0_28, %c7] : memref<2x12xf32, #tpu.memory_space<vmem>>, vector<2x1xf32>
      %c0_29 = arith.constant 0 : index
      %c8 = arith.constant 8 : index
      %74 = vector.load %arg5[%c0_29, %c8] : memref<2x12xf32, #tpu.memory_space<vmem>>, vector<2x1xf32>
      %c0_30 = arith.constant 0 : index
      %c9 = arith.constant 9 : index
      %75 = vector.load %arg5[%c0_30, %c9] : memref<2x12xf32, #tpu.memory_space<vmem>>, vector<2x1xf32>
      %c0_31 = arith.constant 0 : index
      %c10 = arith.constant 10 : index
      %76 = vector.load %arg5[%c0_31, %c10] : memref<2x12xf32, #tpu.memory_space<vmem>>, vector<2x1xf32>
      %c0_32 = arith.constant 0 : index
      %c11 = arith.constant 11 : index
      %77 = vector.load %arg5[%c0_32, %c11] : memref<2x12xf32, #tpu.memory_space<vmem>>, vector<2x1xf32>
      %78 = vector.broadcast %75 : vector<2x1xf32> to vector<2x128xf32>
      %79 = arith.subf %25, %78 : vector<2x128xf32>
      %80 = vector.broadcast %76 : vector<2x1xf32> to vector<2x128xf32>
      %81 = arith.subf %26, %80 : vector<2x128xf32>
      %82 = vector.broadcast %77 : vector<2x1xf32> to vector<2x128xf32>
      %83 = arith.subf %27, %82 : vector<2x128xf32>
      %84 = vector.broadcast %66 : vector<2x1xf32> to vector<2x128xf32>
      %85 = arith.mulf %84, %79 : vector<2x128xf32>
      %86 = vector.broadcast %67 : vector<2x1xf32> to vector<2x128xf32>
      %87 = arith.mulf %86, %81 : vector<2x128xf32>
      %88 = arith.addf %85, %87 : vector<2x128xf32>
      %89 = vector.broadcast %68 : vector<2x1xf32> to vector<2x128xf32>
      %90 = arith.mulf %89, %83 : vector<2x128xf32>
      %91 = arith.addf %88, %90 : vector<2x128xf32>
      %92 = vector.broadcast %69 : vector<2x1xf32> to vector<2x128xf32>
      %93 = arith.mulf %92, %79 : vector<2x128xf32>
      %94 = vector.broadcast %70 : vector<2x1xf32> to vector<2x128xf32>
      %95 = arith.mulf %94, %81 : vector<2x128xf32>
      %96 = arith.addf %93, %95 : vector<2x128xf32>
      %97 = vector.broadcast %71 : vector<2x1xf32> to vector<2x128xf32>
      %98 = arith.mulf %97, %83 : vector<2x128xf32>
      %99 = arith.addf %96, %98 : vector<2x128xf32>
      %100 = vector.broadcast %72 : vector<2x1xf32> to vector<2x128xf32>
      %101 = arith.mulf %100, %79 : vector<2x128xf32>
      %102 = vector.broadcast %73 : vector<2x1xf32> to vector<2x128xf32>
      %103 = arith.mulf %102, %81 : vector<2x128xf32>
      %104 = arith.addf %101, %103 : vector<2x128xf32>
      %105 = vector.broadcast %74 : vector<2x1xf32> to vector<2x128xf32>
      %106 = arith.mulf %105, %83 : vector<2x128xf32>
      %107 = arith.addf %104, %106 : vector<2x128xf32>
      %108 = vector.broadcast %66 : vector<2x1xf32> to vector<2x128xf32>
      %109 = arith.mulf %108, %63 : vector<2x128xf32>
      %110 = vector.broadcast %67 : vector<2x1xf32> to vector<2x128xf32>
      %111 = arith.mulf %110, %64 : vector<2x128xf32>
      %112 = arith.addf %109, %111 : vector<2x128xf32>
      %113 = vector.broadcast %68 : vector<2x1xf32> to vector<2x128xf32>
      %114 = arith.mulf %113, %65 : vector<2x128xf32>
      %115 = arith.addf %112, %114 : vector<2x128xf32>
      %116 = vector.broadcast %69 : vector<2x1xf32> to vector<2x128xf32>
      %117 = arith.mulf %116, %63 : vector<2x128xf32>
      %118 = vector.broadcast %70 : vector<2x1xf32> to vector<2x128xf32>
      %119 = arith.mulf %118, %64 : vector<2x128xf32>
      %120 = arith.addf %117, %119 : vector<2x128xf32>
      %121 = vector.broadcast %71 : vector<2x1xf32> to vector<2x128xf32>
      %122 = arith.mulf %121, %65 : vector<2x128xf32>
      %123 = arith.addf %120, %122 : vector<2x128xf32>
      %124 = vector.broadcast %72 : vector<2x1xf32> to vector<2x128xf32>
      %125 = arith.mulf %124, %63 : vector<2x128xf32>
      %126 = vector.broadcast %73 : vector<2x1xf32> to vector<2x128xf32>
      %127 = arith.mulf %126, %64 : vector<2x128xf32>
      %128 = arith.addf %125, %127 : vector<2x128xf32>
      %129 = vector.broadcast %74 : vector<2x1xf32> to vector<2x128xf32>
      %130 = arith.mulf %129, %65 : vector<2x128xf32>
      %131 = arith.addf %128, %130 : vector<2x128xf32>
      %132 = tpu.concatenate %91, %99, %107, %115, %123, %131 in 1 : vector<2x128xf32>, vector<2x128xf32>, vector<2x128xf32>, vector<2x128xf32>, vector<2x128xf32>, vector<2x128xf32> -> vector<2x768xf32>
      %c0_33 = arith.constant 0 : index
      %c0_34 = arith.constant 0 : index
      %133 = vector.load %arg6[%c0_33, %c0_34] : memref<2x1152xf32, #tpu.memory_space<vmem>>, vector<2x768xf32>
      tpu.vector_store %arg6[%c0_33, %c0_34], %132 {strides = array<i32>} : memref<2x1152xf32, #tpu.memory_space<vmem>>, vector<2x768xf32>,
    } else {
    }
    return
  }
  func.func @transform_0(%arg0: i32) -> (i32, i32) {
    %c0_i32 = arith.constant 0 : i32
    %c0_i32_0 = arith.constant 0 : i32
    %c0_i32_1 = arith.constant 0 : i32
    return %c0_i32, %c0_i32_0 : i32, i32
  }
  func.func @transform_1(%arg0: i32) -> (i32, i32) {
    %c0_i32 = arith.constant 0 : i32
    %c0_i32_0 = arith.constant 0 : i32
    return %c0_i32, %arg0 : i32, i32
  }
  func.func @transform_2(%arg0: i32) -> (i32, i32) {
    %c0_i32 = arith.constant 0 : i32
    %c0_i32_0 = arith.constant 0 : i32
    %c0_i32_1 = arith.constant 0 : i32
    return %c0_i32, %c0_i32_0 : i32, i32
  }
  func.func @transform_3(%arg0: i32) -> (i32, i32) {
    %c0_i32 = arith.constant 0 : i32
    %c0_i32_0 = arith.constant 0 : i32
    %c0_i32_1 = arith.constant 0 : i32
    return %c0_i32, %c0_i32_0 : i32, i32
  }
  func.func @transform_4(%arg0: i32) -> (i32, i32) {
    %c0_i32 = arith.constant 0 : i32
    %c0_i32_0 = arith.constant 0 : i32
    %c0_i32_1 = arith.constant 0 : i32
    return %c0_i32, %c0_i32_0 : i32, i32
  }
  func.func @transform_5(%arg0: i32) -> (i32, i32) {
    %c0_i32 = arith.constant 0 : i32
    %c0_i32_0 = arith.constant 0 : i32
    %c0_i32_1 = arith.constant 0 : i32
    return %c0_i32, %c0_i32_0 : i32, i32
  }
}

</mosaic_0001>

<bundles_post_ra>
// kernel: face_model_forward.1
= control target key start
LH: loop header
LB: loop body
LE: loop exit
PB: predicated region body
PF: predicated region fallthrough
CT: control target
= control target key end

     0   :  { %10 = vsyncpa [#allocation4], 0  ;;  %s1222_s0 = inlined_call_operand.vmem [shape: bf16[2,128], index: 0, kind: input, shape index: {}]   ;;  %s1223_s1 = inlined_call_operand.hbm [shape: bf16[128,768], index: 1, kind: input, shape index: {}]   ;;  %s1224_s2 = inlined_call_operand.hbm [shape: bf16[128,256], index: 2, kind: input, shape index: {}]   ;;  %s1225_s3 = inlined_call_operand.vmem [shape: bf16[128,128], index: 3, kind: input, shape index: {}]   ;;  %s1226_s4 = inlined_call_operand.vmem [shape: f32[2,12], index: 4, kind: input, shape index: {}]   ;;  %s1227_s5 = inlined_call_operand.vmem [shape: f32[2,1152], index: 5, kind: output, shape index: {}]  }
   0x1   :  { %12 = vsyncpa [#allocation4 + $0x1], 0 }
   0x2   :  { %13 = vsyncpa [#allocation6], 0  ;;  %s1045_s18 = smov 0   ;;  %s1047_s19 = smov 0  }
   0x3   :  { %s1049_s20 = smov 0   ;;  %s1051_s21 = smov 0  }
   0x4 LB: > { %s1064_s22 = sadd.s32 4294967295, %s995_s21   ;;  %p60_p0 = scmp.ne.s32.totalorder %s987_s19, %s983_s18  ;;  %s995_s21 = sphi %s1051_s21, %s1234_s21   ;;  %s991_s20 = sphi %s1049_s20, %s1233_s20   ;;  %s987_s19 = sphi %s1047_s19, %s1232_s19   ;;  %s983_s18 = sphi %s1045_s18, %s1231_s18  }
   0x5   : > { %p61_p1 = scmp.eq.s32.totalorder %s1064_s22, 0  ;;  %p720_p2 = scmp.ge.s32.totalorder %s995_s21, 1 }
   0x6   : > { %p155_p3 = scmp.lt.s32.totalorder %s995_s21, 7  ;;  %p721_p4 = scmp.ne.s32.totalorder %s1064_s22, 0 }
   0x7   : > { %p1073_p5 = por %p61_p1, %p60_p0  ;;  %s169_s26 = sshll.u32 %s1224_s2, 4  ;;  %s170_s26 = int_to_ptr.hbm [resolvable:$true] %s169_s26 }
   0x8   : > { %p1080_p6 = pnand %p720_p2, %p155_p3  ;;  %s997_s28 = smov [#allocation5]  }
   0x9   : > { %s171_s29 = sshll.u32 %s997_s28, 4  ;;  %s1089_s30 = sadd.s32 1, %s995_s21   ;;  %s172_s29 = int_to_ptr.vmem [resolvable:$true] %s171_s29 }
   0xa   : > { %p821_p7 = pneg %p1080_p6  ;;  %s998_s6 = smov 128  }
   0xb   : > { %s999_s7 = smov 8   ;;  %s44_s8 = ssub.s32 %s995_s21, %s1089_s30 }
   0xc   : > { %p822_p8 = pnand %p821_p7, %p61_p1  ;;  %s47_s9 = sadd.s32 1, %s991_s20 }
   0xd   : > { %p45_p9 = scmp.eq.s32.totalorder %s44_s8, 0  ;;  %p54_p10 = scmp.ne.s32.totalorder %s991_s20, %s987_s19 }
   0xe   : > { %824 = dma.hbm_to_vmem [thread:$0]  (!%p822_p8), %s170_s26, 2048, %s172_s29, [#allocation6], %s998_s6, %s998_s6, %s999_s7  }
   0xf   : > { %p55_p11 = scmp.eq.s32.totalorder %s995_s21, 0  ;;  %p830_p12 = scmp.lt.s32.totalorder %s995_s21, 6 }
  0x10   : > { %s1099_s10 = scalar_select %p45_p9, %s991_s20, %s47_s9  }
  0x11   : > { %p56_p13 = por %p55_p11, %p54_p10  ;;  %s191_s11 = sand.u32 1, %s991_s20  }
  0x12   : > { %s723_s12 = sshll.u32 %s191_s11, 6  ;;  %s724_s13 = sshll.u32 %s995_s21, 2 }
  0x13   : > { %s199_s16 = scalar_lea.hbm %s1223_s1, %s724_s13  ;;  %s195_s17 = scalar_lea.vmem [#allocation3], %s723_s12 }
  0x14   : > { %s202_s18 = sshll.u32 %s195_s17, 4  ;;  %s200_s24 = sshll.u32 %s199_s16, 4  ;;  %s203_s18 = int_to_ptr.vmem [resolvable:$true] %s202_s18  ;;  %s201_s24 = int_to_ptr.hbm [resolvable:$true] %s200_s24 }
  0x15   : > { %p1106_p0 = pnand %p830_p12, %p56_p13  ;;  %s192_s26 = scalar_lea.sflag [#allocation4], %s191_s11 }
  0x16   : > { %s927_s28 = sshra.s32 %s201_s24, 4  ;;  %s934_s7 = scalar_lea.hbm %s1223_s1, 384  ;;  %s928_s28 = int_to_ptr.hbm [resolvable:$true] %s927_s28 }
  0x17   : > { %s929_s29 = scalar_lea.hbm %s928_s28, 64  ;;  %p931_p3 = pneg %p1106_p0 }
  0x18   : > { %p930_p2 = scmp.ne.s32.totalorder %s928_s28, %s929_s29  ;;  %p935_p9 = scmp.lt.s32.totalorder %s928_s28, %s1223_s1 }
  0x19   : > { %p936_p10 = scmp.lt.s32.totalorder %s934_s7, %s929_s29 }
  0x1a   : > { %p932_p7 = pnand %p931_p3, %p930_p2 }
  0x1b   : > { %p937_p11 = por %p936_p10, %p935_p9 }
  0x1c   : > { %p933_p8 = pneg %p932_p7 }
  0x1e   : > { %p938_p12 = pnand %p937_p11, %p933_p8 }
  0x20   : > { %941 = shalt.err (!%p938_p12)
}
  0x21   : > { %s1000_s11 = smov 384   ;;  %s1001_s12 = smov 64  }
  0x22   : > { %s1002_s13 = smov 4   ;;  %214 = sbr.rel (%p1080_p6) target bundleno = 597 (0x255), region = 40 }
  0x23   : > { %828 = dma.hbm_to_vmem [thread:$0]  (!%p1106_p0), %s201_s24, 1024, %s203_s18, %s192_s26, %s1000_s11, %s1001_s12, %s1002_s13  }
  0x24   : > { %s216_s14 = sand.u32 (!%p1080_p6), 1, %s987_s19  }
  0x25   : > { %s726_s15 = sshll.u32 (!%p1080_p6), %s216_s14, 6  ;;  %s217_s16 = scalar_lea.sflag (!%p1080_p6), [#allocation4], %s216_s14 }
  0x26   : > { %s220_s17 = scalar_lea.vmem (!%p1080_p6), [#allocation3], %s726_s15 }
  0x27   : > { %974 = dma.done.wait (%p1073_p5), %s217_s16, 1024  }
  0x28   : > { %976 = vsyncadd (%p1073_p5), %s217_s16, 4294966272 }
  0x29   : > { %978 = dma.done.wait (%p61_p1), [#allocation6], 2048  }
  0x2a   : > { %980 = vsyncadd (%p61_p1), [#allocation6], 4294965248  ;;  %v775_v0 = vld [vmem:[%s220_s17 + $0x38] sm:$0xff]  ;;  %v774_v1 = vld [vmem:[%s220_s17 + $0x30] sm:$0xff] }
  0x2b   : > { %313 = vmatpush.bf16.msra.mxu0 %v775_v0  ;;  %v773_v2 = vld [vmem:[%s220_s17 + $0x28] sm:$0xff]  ;;  %v772_v3 = vld [vmem:[%s220_s17 + $0x20] sm:$0xff]  ;;  %v771_v4 = vld [vmem:[%s220_s17 + $0x18] sm:$0xff] }
  0x2c   : > { %v770_v5 = vld [vmem:[%s220_s17 + $0x10] sm:$0xff]  ;;  %v769_v6 = vld [vmem:[%s220_s17 + $0x8] sm:$0xff]  ;;  %v768_v7 = vld [vmem:[%s220_s17] sm:$0xff] }
  0x2d   : > { %v248_v8 = vld [vmem:[%s1222_s0] sm:$0x1] }
  0x2f   : > { %314 = vmatpush.bf16.msra.mxu0 %v774_v1 }
  0x33   : > { %315 = vmatpush.bf16.msra.mxu0 %v773_v2 }
  0x37   : > { %316 = vmatpush.bf16.msra.mxu0 %v772_v3 }
  0x3b   : > { %317 = vmatpush.bf16.msra.mxu0 %v771_v4 }
  0x3f   : > { %318 = vmatpush.bf16.msra.mxu0 %v770_v5 }
  0x43   : > { %319 = vmatpush.bf16.msra.mxu0 %v769_v6 }
  0x47   : > { %320 = vmatpush.bf16.msra.mxu0 %v768_v7 }
  0x4a   : > { %321 = vmatmul.bf16.vlgmr.msra.gmra.mxu0 %v248_v8 }
  0xc7   : > { %v322_v9 = vpop.f32.mrf.mxu0 }
  0xcb   : > { %329 = sbr.rel (%p721_p4) target bundleno = 209 (0xd1), region = 52 }
  0xcf   : > { %v324_v10 = vpop.f32.mrf.mxu0 }
  0xd0   : > { %330 = vst [vmem:[#allocation2] sm:$0x3] %v322_v9 }
  0xd1 PF: > { %p761_p1 = scmp.ne.s32.totalorder %s1064_s22, 1 }
  0xd3   : > { %334 = sbr.rel (%p761_p1) target bundleno = 217 (0xd9), region = 56 }
  0xd8   : > { %335 = vst [vmem:[#allocation2 + $0x2] sm:$0x3] %v322_v9 }
  0xd9 PF: > { %p762_p5 = scmp.ne.s32.totalorder %s1064_s22, 2 }
  0xdb   : > { %339 = sbr.rel (%p762_p5) target bundleno = 225 (0xe1), region = 60 }
  0xe0   : > { %340 = vst [vmem:[#allocation2 + $0x4] sm:$0x3] %v322_v9 }
  0xe1 PF: > { %p763_p6 = scmp.ne.s32.totalorder %s1064_s22, 3 }
  0xe3   : > { %344 = sbr.rel (%p763_p6) target bundleno = 233 (0xe9), region = 64 }
  0xe8   : > { %345 = vst [vmem:[%s1227_s5 + $0xc] sm:$0x3] %v322_v9 }
  0xe9 PF: > { %p764_p4 = scmp.ne.s32.totalorder %s1064_s22, 4 }
  0xeb   : > { %349 = sbr.rel (%p764_p4) target bundleno = 241 (0xf1), region = 68 }
  0xf0   : > { %350 = vst [vmem:[%s1227_s5 + $0xe] sm:$0x3] %v322_v9 }
  0xf1 PF: > { %p765_p13 = scmp.ne.s32.totalorder %s1064_s22, 5 }
  0xf3   : > { %354 = sbr.rel (%p765_p13) target bundleno = 597 (0x255), region = 72 }
  0xf8   : > { %v372_v11 = vld [vmem:[#allocation5 + $0x78] sm:$0xff]  ;;  %355 = vst [vmem:[%s1227_s5 + $0x10] sm:$0x3] %v322_v9  ;;  %v371_v12 = vld [vmem:[#allocation5 + $0x70] sm:$0xff]  ;;  %v370_v13 = vld [vmem:[#allocation5 + $0x68] sm:$0xff]  ;;  %v1003_v40 = vmov 11  }
  0xf9   : > { %v404_v14 = vunpack.c.h.bf16 %v372_v11  ;;  %v403_v15 = vunpack.c.l.bf16 %v372_v11  ;;  %v402_v16 = vunpack.c.h.bf16 %v371_v12  ;;  %v401_v17 = vunpack.c.l.bf16 %v371_v12  ;;  %v369_v18 = vld [vmem:[#allocation5 + $0x60] sm:$0xff]  ;;  %v368_v21 = vld [vmem:[#allocation5 + $0x58] sm:$0xff]  ;;  %v367_v24 = vld [vmem:[#allocation5 + $0x50] sm:$0xff]  ;;  %884 = vset.pattern.permute.xlu1 %v1003_v40 }
  0xfa   : > { %v400_v19 = vunpack.c.h.bf16 %v370_v13  ;;  %v399_v20 = vunpack.c.l.bf16 %v370_v13  ;;  %v398_v22 = vunpack.c.h.bf16 %v369_v18  ;;  %v397_v23 = vunpack.c.l.bf16 %v369_v18  ;;  %v814_v25 = vld [vmem:[%s1225_s3 + $0x38] sm:$0xff]   ;;  %v366_v28 = vld [vmem:[#allocation5 + $0x48] sm:$0xff]  ;;  %v365_v33 = vld [vmem:[#allocation5 + $0x40] sm:$0xff] }
  0xfb   : > { %425 = vmatpush.msra.mxu1 %v404_v14  ;;  %405 = vmatpush.msra.mxu0 %v403_v15  ;;  %v396_v26 = vunpack.c.h.bf16 %v368_v21  ;;  %v395_v27 = vunpack.c.l.bf16 %v368_v21  ;;  %v394_v29 = vunpack.c.h.bf16 %v367_v24  ;;  %v393_v30 = vunpack.c.l.bf16 %v367_v24  ;;  %v813_v32 = vld [vmem:[%s1225_s3 + $0x30] sm:$0xff]   ;;  %v1159_v37 = vld [vmem:[%s1226_s4] sm:$0x3]  ;;  %v812_v43 = vld [vmem:[%s1225_s3 + $0x28] sm:$0xff]  }
  0xfc   : > { %v807_v31 = vunpack.c.h.bf16 %v814_v25  ;;  %v806_v34 = vunpack.c.l.bf16 %v814_v25  ;;  %v392_v35 = vunpack.c.h.bf16 %v366_v28  ;;  %v391_v36 = vunpack.c.l.bf16 %v366_v28  ;;  %v364_v38 = vld [vmem:[#allocation5 + $0x38] sm:$0xff]  ;;  %v363_v44 = vld [vmem:[#allocation5 + $0x30] sm:$0xff]  ;;  %568 = vperm.xlu1 %884, %v1159_v37   ;;  %v362_v48 = vld [vmem:[#allocation5 + $0x28] sm:$0xff] }
  0xfd   : > { %426 = vmatpush.msra.mxu1 %v402_v16  ;;  %406 = vmatpush.msra.mxu0 %v401_v17  ;;  %v803_v39 = vunpack.c.h.bf16 %v813_v32  ;;  %v390_v41 = vunpack.c.h.bf16 %v365_v33  ;;  %v389_v42 = vunpack.c.l.bf16 %v365_v33  ;;  %v802_v45 = vunpack.c.l.bf16 %v813_v32  ;;  %v811_v52 = vld [vmem:[%s1225_s3 + $0x20] sm:$0xff]   ;;  %v361_v53 = vld [vmem:[#allocation5 + $0x20] sm:$0xff]  ;;  %v810_v61 = vld [vmem:[%s1225_s3 + $0x18] sm:$0xff]  }
  0xfe   : > { %507 = vmatpush.msra.mxu2 %v807_v31  ;;  %v388_v46 = vunpack.c.h.bf16 %v364_v38  ;;  %v387_v47 = vunpack.c.l.bf16 %v364_v38  ;;  %v799_v49 = vunpack.c.h.bf16 %v812_v43  ;;  %v386_v50 = vunpack.c.h.bf16 %v363_v44  ;;  %v360_v57 = vld [vmem:[#allocation5 + $0x18] sm:$0xff]  ;;  %v359_v62 = vld [vmem:[#allocation5 + $0x10] sm:$0xff]  ;;  %v358_v2 = vld [vmem:[#allocation5 + $0x8] sm:$0xff] }
  0xff   : > { %427 = vmatpush.msra.mxu1 %v400_v19  ;;  %407 = vmatpush.msra.mxu0 %v399_v20  ;;  %v385_v51 = vunpack.c.l.bf16 %v363_v44  ;;  %v798_v54 = vunpack.c.l.bf16 %v812_v43  ;;  %v384_v55 = vunpack.c.h.bf16 %v362_v48  ;;  %v383_v56 = vunpack.c.l.bf16 %v362_v48  ;;  %v357_v6 = vld [vmem:[#allocation5] sm:$0xff]  ;;  %v1171_v11 = vld [vmem:[#allocation2] sm:$0x3f]  ;;  %v809_v13 = vld [vmem:[%s1225_s3 + $0x10] sm:$0xff]  }
 0x100   : > { %508 = vmatpush.msra.mxu2 %v806_v34  ;;  %v795_v58 = vunpack.c.h.bf16 %v811_v52  ;;  %v382_v59 = vunpack.c.h.bf16 %v361_v53  ;;  %v381_v60 = vunpack.c.l.bf16 %v361_v53  ;;  %v794_v63 = vunpack.c.l.bf16 %v811_v52  ;;  %v808_v16 = vld [vmem:[%s1225_s3 + $0x8] sm:$0xff]   ;;  %v777_v19 = vld [vmem:[%s1225_s3] sm:$0xff]  }
 0x101   : > { %428 = vmatpush.msra.mxu1 %v398_v22  ;;  %408 = vmatpush.msra.mxu0 %v397_v23  ;;  %v380_v0 = vunpack.c.h.bf16 %v360_v57  ;;  %v379_v1 = vunpack.c.l.bf16 %v360_v57  ;;  %v791_v3 = vunpack.c.h.bf16 %v810_v61  ;;  %v378_v4 = vunpack.c.h.bf16 %v359_v62 }
 0x102   : > { %509 = vmatpush.msra.mxu2 %v803_v39  ;;  %v377_v5 = vunpack.c.l.bf16 %v359_v62  ;;  %v376_v7 = vunpack.c.h.bf16 %v358_v2  ;;  %v375_v8 = vunpack.c.l.bf16 %v358_v2  ;;  %v374_v9 = vunpack.c.h.bf16 %v357_v6 }
 0x103   : > { %429 = vmatpush.msra.mxu1 %v396_v26  ;;  %409 = vmatpush.msra.mxu0 %v395_v27  ;;  %v373_v10 = vunpack.c.l.bf16 %v357_v6  ;;  %v790_v12 = vunpack.c.l.bf16 %v810_v61  ;;  %v787_v14 = vunpack.c.h.bf16 %v809_v13  ;;  %v786_v15 = vunpack.c.l.bf16 %v809_v13 }
 0x104   : > { %510 = vmatpush.msra.mxu2 %v802_v45  ;;  %v783_v17 = vunpack.c.h.bf16 %v808_v16  ;;  %v782_v18 = vunpack.c.l.bf16 %v808_v16  ;;  %v1004_v20 = vmov 0   ;;  %v779_v21 = vunpack.c.h.bf16 %v777_v19 }
 0x105   : > { %430 = vmatpush.msra.mxu1 %v394_v29  ;;  %410 = vmatpush.msra.mxu0 %v393_v30  ;;  %v778_v22 = vunpack.c.l.bf16 %v777_v19  ;;  %v1005_v23 = vmov 9   ;;  %v1006_v24 = vmov 1   ;;  %v1007_v25 = vmov 4  }
 0x106   : > { %511 = vmatpush.msra.mxu2 %v799_v49  ;;  %885 = vset.pattern.permute.xlu1 %v1004_v20  ;;  %v1008_v26 = vmov 10   ;;  %v1009_v27 = vmov 3   ;;  %v1010_v28 = vmov 2   ;;  %v1011_v31 = vmov 7  }
 0x107   : > { %431 = vmatpush.msra.mxu1 %v392_v35  ;;  %411 = vmatpush.msra.mxu0 %v391_v36  ;;  %v1012_v35 = vmov 6   ;;  %v1013_v39 = vmov 8   ;;  %vm471_vm0 = vcmask 1041408   ;;  %vm473_vm1 = vcmask 1043456  }
 0x108   : > { %512 = vmatpush.msra.mxu2 %v798_v54  ;;  %574 = vperm.xlu1 %885, %v1159_v37   ;;  %v1014_v48 = vmov 5   ;;  %vm662_vm5 = vcmask 1045508  }
 0x109   : > { %432 = vmatpush.msra.mxu1 %v390_v41  ;;  %412 = vmatpush.msra.mxu0 %v389_v42 }
 0x10a   : > { %513 = vmatpush.msra.mxu2 %v795_v58  ;;  %882 = vset.pattern.permute.xlu0 %v1005_v23 }
 0x10b   : > { %433 = vmatpush.msra.mxu1 %v388_v46  ;;  %413 = vmatpush.msra.mxu0 %v387_v47 }
 0x10c   : > { %514 = vmatpush.msra.mxu2 %v794_v63  ;;  %557 = vperm.xlu0 %882, %v1159_v37  }
 0x10d   : > { %434 = vmatpush.msra.mxu1 %v386_v50  ;;  %414 = vmatpush.msra.mxu0 %v385_v51 }
 0x10e   : > { %515 = vmatpush.msra.mxu2 %v791_v3  ;;  %886 = vset.pattern.permute.xlu2 %v1006_v24 }
 0x10f   : > { %435 = vmatpush.msra.mxu1 %v384_v55  ;;  %415 = vmatpush.msra.mxu0 %v383_v56 }
 0x110   : > { %516 = vmatpush.msra.mxu2 %v790_v12  ;;  %579 = vperm.xlu2 %886, %v1159_v37  }
 0x111   : > { %436 = vmatpush.msra.mxu1 %v382_v59  ;;  %416 = vmatpush.msra.mxu0 %v381_v60 }
 0x112   : > { %517 = vmatpush.msra.mxu2 %v787_v14  ;;  %888 = vset.pattern.permute.xlu1 %v1007_v25 }
 0x113   : > { %437 = vmatpush.msra.mxu1 %v380_v0  ;;  %417 = vmatpush.msra.mxu0 %v379_v1 }
 0x114   : > { %518 = vmatpush.msra.mxu2 %v786_v15  ;;  %602 = vperm.xlu1 %888, %v1159_v37  }
 0x115   : > { %438 = vmatpush.msra.mxu1 %v378_v4  ;;  %418 = vmatpush.msra.mxu0 %v377_v5 }
 0x116   : > { %519 = vmatpush.msra.mxu2 %v783_v17  ;;  %883 = vset.pattern.permute.xlu0 %v1008_v26 }
 0x117   : > { %439 = vmatpush.msra.mxu1 %v376_v7  ;;  %419 = vmatpush.msra.mxu0 %v375_v8 }
 0x118   : > { %520 = vmatpush.msra.mxu2 %v782_v18  ;;  %562 = vperm.xlu0 %883, %v1159_v37  }
 0x119   : > { %440 = vmatpush.msra.mxu1 %v374_v9  ;;  %420 = vmatpush.msra.mxu0 %v373_v10 }
 0x11a   : > { %441 = vmatmul.f32.vlgmr.msra.gmra.mxu1 %v1171_v11  ;;  %421 = vmatmul.f32.vlgmr.msra.gmra.mxu0 %v1171_v11 }
 0x11b   : > { %521 = vmatpush.msra.mxu2 %v779_v21  ;;  %887 = vset.pattern.permute.xlu2 %v1009_v27 }
 0x11c   : > { %597 = vperm.xlu2 %887, %v1159_v37   ;;  %891 = vset.pattern.permute.xlu1 %v1010_v28 }
 0x11d   : > { %522 = vmatpush.msra.mxu2 %v778_v22  ;;  %588 = vperm.xlu1 %891, %v1159_v37  }
 0x120   : > { %890 = vset.pattern.permute.xlu0 %v1011_v31 }
 0x121   : > { %619 = vperm.xlu0 %890, %v1159_v37  }
 0x124   : > { %889 = vset.pattern.permute.xlu2 %v1012_v35 }
 0x125   : > { %614 = vperm.xlu2 %889, %v1159_v37   ;;  %893 = vset.pattern.permute.xlu1 %v1013_v39 }
 0x126   : > { %625 = vperm.xlu1 %893, %v1159_v37  }
 0x129   : > { %894 = vset.pattern.permute.xlu0 %v1013_v39 }
 0x12d   : > { %892 = vset.pattern.permute.xlu2 %v1014_v48 }
 0x12e   : > { %608 = vperm.xlu2 %892, %v1159_v37  }
 0x16a   : > { %v580_v52 = vpop.permute.xlu2 %579 }
 0x16e   : > { %v569_v51 = vpop.permute.xlu1 %568 }
 0x16f   : > { %v570_v5 = vrot.slane %v569_v51, 4 }
 0x171   : > { %v572_v12 = vsub.f32 %v1171_v11, %v570_v5 }
 0x173   : > { %v592_v18 = vrot.slane %v572_v12, 4 }
 0x176   : > { %v598_v61 = vpop.permute.xlu2 %597 }
 0x17a   : > { %v575_v53 = vpop.permute.xlu1 %574 }
 0x17e   : > { %v558_v55 = vpop.permute.xlu0 %557 }
 0x17f   : > { %v615_v2 = vpop.permute.xlu2 %614  ;;  %v560_v8 = vsub.f32 %v1171_v11, %v558_v55 }
 0x181   : > { %v600_v14 = vmul.f32 %v598_v61, %v560_v8  ;;  %v617_v21 = vmul.f32 %v615_v2, %v560_v8  ;;  %v577_v25 = vmul.f32 %v575_v53, %v560_v8 }
 0x186   : > { %v603_v63 = vpop.permute.xlu1 %602 }
 0x188   : > { %v609_v20 = vpop.permute.xlu2 %608 }
 0x189   : > { %v611_v31 = vmul.f32 %v609_v20, %v592_v18 }
 0x18a   : > { %v563_v0 = vpop.permute.xlu0 %562 }
 0x18b   : > { %v564_v1 = vrot.slane %v563_v0, 6 }
 0x18d   : > { %v566_v3 = vsub.f32 %v1171_v11, %v564_v1 }
 0x18f   : > { %v589_v6 = vpop.permute.xlu1 %588  ;;  %v583_v9 = vrot.slane %v566_v3, 2 }
 0x191   : > { %v605_v16 = vmul.f32 %v603_v63, %v583_v9  ;;  %v585_v26 = vmul.f32 %v583_v9, %v580_v52 }
 0x193   : > { %v620_v17 = vpop.permute.xlu0 %619  ;;  %v606_v27 = vadd.f32 %v605_v16, %v600_v14 }
 0x194   : > { %v622_v24 = vmul.f32 %v620_v17, %v583_v9 }
 0x197   : > { %v442_v29 = vpop.f32.mrf.mxu1  ;;  %v422_v30 = vpop.f32.mrf.mxu0 }
 0x198   : > { %v446_v32 = vrot.slane %v442_v29, 2  ;;  %v449_v33 = vrot.slane %v442_v29, 6  ;;  %v456_v34 = vrot.slane %v442_v29, 4  ;;  %v626_v28 = vpop.permute.xlu1 %625 }
 0x199   : > { %v628_v35 = vmul.f32 %v626_v28, %v592_v18 }
 0x19a   : > { %v451_v36 = vmul.f32 %v449_v33, %v422_v30  ;;  %v458_v38 = vmul.f32 %v456_v34, %v422_v30  ;;  %v448_v40 = vmul.f32 %v446_v32, %v422_v30  ;;  %v623_v34 = vadd.f32 %v622_v24, %v617_v21 }
 0x19c   : > { %v453_v41 = vrot.slane %v451_v36, 2  ;;  %v460_v42 = vrot.slane %v458_v38, 4  ;;  %v586_v36 = vadd.f32 %v585_v26, %v577_v25  ;;  %v629_v48 = vadd.f32 %v628_v35, %v623_v34 }
 0x19e   : > { %v455_v43 = vsub.f32 %v448_v40, %v453_v41  ;;  %v462_v44 = vsub.f32 %v458_v38, %v460_v42  ;;  %v594_v38 = vmul.f32 %v592_v18, %v589_v6  ;;  %v612_v41 = vadd.f32 %v611_v31, %v606_v27 }
 0x1a0   : > { %v464_v45 = vrot.slane %v455_v43, 2  ;;  %v467_v46 = vrot.slane %v462_v44, 2  ;;  %v469_v47 = vrot.slane %v455_v43, 4 }
 0x1a2   : > { %v472_v49 = vsel %vm471_vm0, %v464_v45, %v467_v46 }
 0x1a3   : > { %v474_v50 = vsel %vm473_vm1, %v472_v49, %v469_v47 }
 0x1a4   : > { %523 = vmatmul.f32.vlgmr.msra.gmra.mxu2 %v474_v50 }
 0x227   : > { %v524_v54 = vpop.f32.mrf.mxu2 }
 0x228   : > { %v527_v56 = vmul.f32 %v524_v54, %v524_v54 }
 0x22a   : > { %v529_v57 = vrot.slane %v527_v56, 2  ;;  %v532_v59 = vrot.slane %v527_v56, 4 }
 0x22c   : > { %v531_v58 = vadd.f32 %v529_v57, %v527_v56  ;;  %v657_v56 = vrot.slane %v612_v41, 6 }
 0x22e   : > { %v534_v60 = vadd.f32 %v532_v59, %v531_v58 }
 0x230   : > { %v535_v62 = vmax.f32 %v534_v60, 1e-24 }
 0x232   : > { %895 = vrsqrt.f32 %v535_v62  ;;  %vm542_vm3 = vweird.f32 %v535_v62 }
 0x238   : > { %v896_v37 = vpop.eup %895 }
 0x239   : > { %v537_v4 = vmul.f32 %v896_v37, %v535_v62  ;;  %vm543_vm2 = vweird.f32 %v896_v37 }
 0x23a   : > { %vm544_vm4 = vmor %vm542_vm3, %vm543_vm2 }
 0x23b   : > { %v538_v7 = vmul.f32 %v896_v37, %v537_v4 }
 0x23d   : > { %v539_v10 = vmul.f32 0.5, %v538_v7 }
 0x23f   : > { %v540_v13 = vsub.f32 1.5, %v539_v10 }
 0x241   : > { %v541_v15 = vmul.f32 %v896_v37, %v540_v13 }
 0x243   : > { %v545_v19 = vsel %vm544_vm4, %v896_v37, %v541_v15 }
 0x244   : > { %v548_v22 = vrot.slane %v545_v19, 6  ;;  %v551_v23 = vrot.slane %v545_v19, 4  ;;  %v546_v11 = vmul.f32 %v545_v19, %v524_v54 }
 0x246   : > { %v550_v29 = vmul.f32 %v548_v22, %v524_v54  ;;  %v553_v30 = vmul.f32 %v551_v23, %v524_v54  ;;  %v630_v39 = vmul.f32 %v575_v53, %v546_v11  ;;  %v641_v43 = vmul.f32 %v598_v61, %v546_v11 }
 0x247   : > { %v646_v44 = vmul.f32 %v615_v2, %v546_v11  ;;  %v595_v54 = vadd.f32 %v594_v38, %v586_v36  ;;  %v658_v53 = vrot.slane %v629_v48, 4 }
 0x248   : > { %v632_v32 = vrot.slane %v550_v29, 2  ;;  %v637_v33 = vrot.slane %v553_v30, 4 }
 0x249   : > { %v661_v61 = vsel %vm471_vm0, %v595_v54, %v657_v56 }
 0x24a   : > { %v634_v40 = vmul.f32 %v632_v32, %v580_v52  ;;  %v642_v42 = vmul.f32 %v632_v32, %v603_v63  ;;  %v647_v45 = vmul.f32 %v632_v32, %v620_v17  ;;  %v639_v47 = vmul.f32 %v637_v33, %v589_v6 }
 0x24b   : > { %v649_v51 = vmul.f32 %v637_v33, %v626_v28  ;;  %v644_v57 = vmul.f32 %v637_v33, %v609_v20 }
 0x24c   : > { %v635_v46 = vadd.f32 %v634_v40, %v630_v39  ;;  %v643_v49 = vadd.f32 %v642_v42, %v641_v43  ;;  %v648_v50 = vadd.f32 %v647_v45, %v646_v44 }
 0x24e   : > { %v640_v55 = vadd.f32 %v639_v47, %v635_v46  ;;  %v650_v58 = vadd.f32 %v649_v51, %v648_v50  ;;  %v645_v52 = vadd.f32 %v644_v57, %v643_v49 }
 0x250   : > { %v659_v59 = vrot.slane %v640_v55, 2  ;;  %v660_v60 = vrot.slane %v650_v58, 6 }
 0x252   : > { %v663_v62 = vsel %vm662_vm5, %v658_v53, %v659_v59  ;;  %v665_v0 = vsel %vm471_vm0, %v645_v52, %v660_v60 }
 0x253   : > { %v664_v63 = vsel %vm473_vm1, %v661_v61, %v663_v62  ;;  %669 = vst [vmem:[%s1227_s5 + $0x8] sm:$0xf] %v665_v0 }
 0x254   : > { %668 = vst [vmem:[%s1227_s5] sm:$0xff] %v664_v63 }
 0x255 PF: > { %p16_p0 = scmp.ge.s32.totalorder %s1089_s30, 8   ;;  %s1231_s18 = smov %s987_s19 }
 0x256   : > { %s1232_s19 = smov %s991_s20  ;;  %s1233_s20 = smov %s1099_s10 }
 0x257   : > { %s1234_s21 = smov %s1089_s30  ;;  %18 = sbr.rel (!%p16_p0) target bundleno = 4 (0x4), region = 104 }
 0x25c   :  { %681 = vsyncpa [#allocation4], 1 }
 0x25d   :  { %683 = vsyncpa [#allocation4 + $0x1], 1 }
 0x25e   :  { %684 = vsyncpa [#allocation6], 1 }

</bundles_post_ra>
